<compile_context>
chip_gen: v7x
topology: tpu7x:2x2x1
jax: 0.10.0
libtpu: 0.0.40
codegen_flags: <defaults>
</compile_context>

<pallas_src>
import functools

import jax
import jax.numpy as jnp
from jax.experimental import pallas as pl
from jax.experimental.pallas import tpu as pltpu


def _soft_quantize_kernel(x_ref, w_ref, o_ref, *, approx_recip):
    """x_ref: (TILE_N, K) logits (native dtype), w_ref: (K, E_pad) codebook
    (matmul dtype), o_ref: (TILE_N, E_pad) output."""
    x = x_ref[...].astype(jnp.float32)                     # (TILE_N, K)

    # numerically stable softmax numerator along the codebook (lane) axis
    m = jnp.max(x, axis=-1, keepdims=True)                 # XLU lane reduce
    e = jnp.exp(x - m)                                     # EUP
    s = jnp.sum(e, axis=-1, keepdims=True)                 # (TILE_N, 1)

    # unnormalized projection on the MXU with f32 accumulation
    y = jnp.dot(e.astype(w_ref.dtype), w_ref[...],
                preferred_element_type=jnp.float32)        # (TILE_N, E_pad)

    # normalize AFTER the matmul: one narrow reciprocal + one (TILE_N, E_pad)
    # multiply instead of a (TILE_N, K)-wide divide.
    inv = pl.reciprocal(s, approx=approx_recip)            # EUP (approx) / exact
    o_ref[...] = (y * inv).astype(o_ref.dtype)


def _derive_vmem_limit_bytes():
    """Per-generation VMEM request: ~3/4 of physical, never above 96 MiB."""
    try:
        phys = pltpu.get_tpu_info().vmem_capacity_bytes
        return min((int(phys) * 3) // 4, 96 << 20)   # v7x -> 48 MiB, v5e/v6e -> 96 MiB
    except Exception:
        return 48 << 20                              # safe on every generation


def soft_quantize_forward(x, weight, *, tile_n=2048, matmul_dtype=jnp.bfloat16,
                          out_dtype=None, approx_recip=None):
    """Pallas forward of Soft_quantize (gumbel=False path).

    x:      (..., num_embeddings) logits, any float dtype (kept as-is on the wire).
    weight: (embedding_dim, num_embeddings) -- torch nn.Linear(K, E).weight.
    Returns (..., embedding_dim) in `out_dtype` (default: x.dtype).
    """
    # TODO(synk): gumbel=True path (F.gumbel_softmax) needs in-kernel sampling
    # (pltpu.prng_seed / prng_random_bits); only the default Softmax path is
    # implemented here.
    # TODO(synk): for very large codebooks (K >= ~8-16K) add a K grid axis with
    # an online-softmax accumulator instead of loading the full K row per tile.
    E, K = weight.shape
    assert x.shape[-1] == K, "last dim of x must equal num_embeddings"
    lead = x.shape[:-1]
    if out_dtype is None:
        out_dtype = x.dtype
    if approx_recip is None:
        # exact divide on the f32-check path, EUP approx on the bf16 prod path
        approx_recip = jnp.dtype(matmul_dtype) != jnp.dtype(jnp.float32)

    # lane-dense output: pad E up to a 128 multiple via zero weight columns,
    # slice the padding off afterwards (unmasked vst instead of vst.msk).
    E_pad = ((E + 127) // 128) * 128

    x_flat = x.reshape(-1, K)                       # keep native dtype (bf16 in prod)
    N = x_flat.shape[0]

    w_t = weight.T.astype(matmul_dtype)             # (K, E): transpose+cast ONCE here
    if E_pad != E:
        w_t = jnp.pad(w_t, ((0, 0), (0, E_pad - E)))

    vmem_limit = _derive_vmem_limit_bytes()

    # VMEM budget: 2x double-buffered logits tile + 2x output tile + resident
    # codebook + headroom for Mosaic internal scratch.
    in_bytes = jnp.dtype(x_flat.dtype).itemsize
    w_bytes = jnp.dtype(matmul_dtype).itemsize
    o_bytes = jnp.dtype(out_dtype).itemsize
    weight_bytes = K * E_pad * w_bytes
    headroom = 2 << 20
    per_row = 2 * (K * in_bytes + E_pad * o_bytes)
    tile_cap = max(16, ((vmem_limit - weight_bytes - headroom) // per_row) // 16 * 16)

    n_ceil16 = ((N + 15) // 16) * 16
    tile_n = min(int(tile_n), tile_cap, n_ceil16)
    if tile_n >= 256:
        tile_n = (tile_n // 256) * 256              # fill the 256-tall MXU (v6e/v7x)
    else:
        tile_n = max(16, (tile_n // 16) * 16)       # bf16 sublane packing

    n_tiles = pl.cdiv(N, tile_n)
    n_pad = n_tiles * tile_n
    if n_pad != N:
        x_flat = jnp.pad(x_flat, ((0, n_pad - N), (0, 0)))

    kernel = functools.partial(_soft_quantize_kernel, approx_recip=approx_recip)

    def make_call(single_buffer_weight):
        if single_buffer_weight:
            # constant block -> no point double-buffering it (VMEM saver on v7x)
            w_spec = pl.BlockSpec((K, E_pad), lambda i: (0, 0),
                                  pipeline_mode=pl.Buffered(1))
        else:
            w_spec = pl.BlockSpec((K, E_pad), lambda i: (0, 0))
        return pl.pallas_call(
            kernel,
            out_shape=jax.ShapeDtypeStruct((n_pad, E_pad), out_dtype),
            grid_spec=pltpu.PrefetchScalarGridSpec(
                num_scalar_prefetch=0,
                grid=(n_tiles,),
                in_specs=[
                    pl.BlockSpec((tile_n, K), lambda i: (i, 0)),   # logits tile
                    w_spec,                                        # resident codebook
                ],
                out_specs=pl.BlockSpec((tile_n, E_pad), lambda i: (i, 0)),
            ),
            compiler_params=pltpu.CompilerParams(
                dimension_semantics=("parallel",),   # independent tiles
                vmem_limit_bytes=vmem_limit,
            ),
        )

    try:
        out = make_call(True)(x_flat, w_t)
    except Exception:
        # fall back to default double-buffering if Buffered(1) is rejected
        out = make_call(False)(x_flat, w_t)

    return out[:N, :E].reshape(*lead, E)


def _reference(x, weight):
    """Pure-JAX reference matching the torch forward (gumbel=False)."""
    p = jax.nn.softmax(x.astype(jnp.float32), axis=-1)
    return p @ weight.astype(jnp.float32).T


if __name__ == "__main__":
    # module hyper-params
    embedding_dim = 32      # E
    num_embeddings = 64     # K

    key = jax.random.PRNGKey(0)
    k_w, k_x = jax.random.split(key)

    # nn.Linear(num_embeddings, embedding_dim, bias=False).weight : (E, K),
    # uniform(-1/sqrt(K), 1/sqrt(K))
    bound = 1.0 / (num_embeddings ** 0.5)
    W = jax.random.uniform(k_w, (embedding_dim, num_embeddings),
                           dtype=jnp.float32, minval=-bound, maxval=bound)

    # logits: (batch=2, seq=9, num_embeddings) -- N=18 tokens exercises the
    # tile-padding / multi-tile path with tile_n=16.
    B, L = 2, 9
    x = jax.random.normal(k_x, (B, L, num_embeddings), dtype=jnp.float32)

    # 1) f32 check path (exact reciprocal, f32 MXU) -- tight tolerance
    y32 = soft_quantize_forward(x, W, tile_n=16,
                                matmul_dtype=jnp.float32, out_dtype=jnp.float32)
    y32 = jax.block_until_ready(y32)
    y_ref = _reference(x, W)
    assert y32.shape == (B, L, embedding_dim)
    assert jnp.allclose(y32, y_ref, atol=1e-5, rtol=1e-5), \
        f"f32 path max abs err {jnp.max(jnp.abs(y32 - y_ref))}"

    # 2) production path: bf16 logits / codebook / output, bf16 MXU, f32 accum,
    #    approx EUP reciprocal -- relaxed tolerance
    x_bf16 = x.astype(jnp.bfloat16)
    y_bf = soft_quantize_forward(x_bf16, W)          # defaults: bf16 everywhere
    y_bf = jax.block_until_ready(y_bf)
    assert y_bf.shape == (B, L, embedding_dim)
    assert y_bf.dtype == jnp.bfloat16
    y_ref_bf = _reference(x_bf16.astype(jnp.float32), W)
    err = jnp.max(jnp.abs(y_bf.astype(jnp.float32) - y_ref_bf))
    assert err < 2e-2, f"bf16 path max abs err {err}"

    print("KERNEL_OK")
</pallas_src>

<mosaic_0001>
module attributes {stable_mosaic.version = 11 : i64} {
  func.func @_soft_quantize_kernel(%arg0: i32, %arg1: memref<16x64xf32, #tpu.memory_space<vmem>>, %arg2: memref<64x128xf32, #tpu.memory_space<vmem>>, %arg3: memref<16x128xf32, #tpu.memory_space<vmem>>) attributes {dimension_semantics = [#tpu.dimension_semantics<parallel>], iteration_bounds = array<i64: 2>, scalar_prefetch = 0 : i64, scratch_operands = 0 : i64, tpu.core_type = #tpu.core_type<tc>, window_params = [{transform_indices = @transform_0, window_bounds = array<i64: 16, 64>}, {pipeline_mode = #tpu.pipeline_mode<synchronous>, transform_indices = @transform_1, window_bounds = array<i64: 64, 128>}, {transform_indices = @transform_2, window_bounds = array<i64: 16, 128>}]} {
    %c0 = arith.constant 0 : index
    %c0_0 = arith.constant 0 : index
    %0 = vector.load %arg1[%c0, %c0_0] : memref<16x64xf32, #tpu.memory_space<vmem>>, vector<16x64xf32>
    %cst = arith.constant dense<0xFF800000> : vector<16xf32>
    %1 = vector.multi_reduction <maximumf>, %0, %cst [1] : vector<16x64xf32> to vector<16xf32>
    %2 = vector.shape_cast %1 : vector<16xf32> to vector<16x1xf32>
    %3 = vector.broadcast %2 : vector<16x1xf32> to vector<16x64xf32>
    %4 = arith.subf %0, %3 : vector<16x64xf32>
    %5 = math.exp %4 : vector<16x64xf32>
    %cst_1 = arith.constant dense<0.000000e+00> : vector<16xf32>
    %6 = vector.multi_reduction <add>, %5, %cst_1 [1] : vector<16x64xf32> to vector<16xf32>
    %7 = vector.shape_cast %6 : vector<16xf32> to vector<16x1xf32>
    %c0_2 = arith.constant 0 : index
    %c0_3 = arith.constant 0 : index
    %8 = vector.load %arg2[%c0_2, %c0_3] : memref<64x128xf32, #tpu.memory_space<vmem>>, vector<64x128xf32>
    %cst_4 = arith.constant dense<0.000000e+00> : vector<16x128xf32>
    %9 = tpu.matmul %5, %8, %cst_4 {dimension_numbers = #tpu.dot_dimension_numbers<[1], [0], [0], [1], [0, 0, 1, 1], [], []>} : vector<16x64xf32>, vector<64x128xf32>, vector<16x128xf32> -> vector<16x128xf32>
    %10 = tpu.reciprocal %7 : vector<16x1xf32> -> vector<16x1xf32>
    %11 = vector.broadcast %10 : vector<16x1xf32> to vector<16x128xf32>
    %12 = arith.mulf %9, %11 : vector<16x128xf32>
    %c0_5 = arith.constant 0 : index
    %c0_6 = arith.constant 0 : index
    %13 = vector.load %arg3[%c0_5, %c0_6] : memref<16x128xf32, #tpu.memory_space<vmem>>, vector<16x128xf32>
    tpu.vector_store %arg3[%c0_5, %c0_6], %12 {strides = array<i32>} : memref<16x128xf32, #tpu.memory_space<vmem>>, vector<16x128xf32>,
    return
  }
  func.func @transform_0(%arg0: i32) -> (i32, i32) {
    %c0_i32 = arith.constant 0 : i32
    %c0_i32_0 = arith.constant 0 : i32
    return %arg0, %c0_i32 : i32, i32
  }
  func.func @transform_1(%arg0: i32) -> (i32, i32) {
    %c0_i32 = arith.constant 0 : i32
    %c0_i32_0 = arith.constant 0 : i32
    %c0_i32_1 = arith.constant 0 : i32
    return %c0_i32, %c0_i32_0 : i32, i32
  }
  func.func @transform_2(%arg0: i32) -> (i32, i32) {
    %c0_i32 = arith.constant 0 : i32
    %c0_i32_0 = arith.constant 0 : i32
    return %arg0, %c0_i32 : i32, i32
  }
}

module attributes {stable_mosaic.version = 11 : i64} {
  func.func @_soft_quantize_kernel(%arg0: i32, %arg1: memref<16x64xf32, #tpu.memory_space<vmem>>, %arg2: memref<64x128xf32, #tpu.memory_space<vmem>>, %arg3: memref<16x128xf32, #tpu.memory_space<vmem>>) attributes {dimension_semantics = [#tpu.dimension_semantics<parallel>], iteration_bounds = array<i64: 2>, scalar_prefetch = 0 : i64, scratch_operands = 0 : i64, tpu.core_type = #tpu.core_type<tc>, window_params = [{transform_indices = @transform_0, window_bounds = array<i64: 16, 64>}, {pipeline_mode = #tpu.pipeline_mode<synchronous>, transform_indices = @transform_1, window_bounds = array<i64: 64, 128>}, {transform_indices = @transform_2, window_bounds = array<i64: 16, 128>}]} {
    %c0 = arith.constant 0 : index
    %c0_0 = arith.constant 0 : index
    %0 = vector.load %arg1[%c0, %c0_0] : memref<16x64xf32, #tpu.memory_space<vmem>>, vector<16x64xf32>
    %cst = arith.constant dense<0xFF800000> : vector<16xf32>
    %1 = vector.multi_reduction <maximumf>, %0, %cst [1] : vector<16x64xf32> to vector<16xf32>
    %2 = vector.shape_cast %1 : vector<16xf32> to vector<16x1xf32>
    %3 = vector.broadcast %2 : vector<16x1xf32> to vector<16x64xf32>
    %4 = arith.subf %0, %3 : vector<16x64xf32>
    %5 = math.exp %4 : vector<16x64xf32>
    %cst_1 = arith.constant dense<0.000000e+00> : vector<16xf32>
    %6 = vector.multi_reduction <add>, %5, %cst_1 [1] : vector<16x64xf32> to vector<16xf32>
    %7 = vector.shape_cast %6 : vector<16xf32> to vector<16x1xf32>
    %c0_2 = arith.constant 0 : index
    %c0_3 = arith.constant 0 : index
    %8 = vector.load %arg2[%c0_2, %c0_3] : memref<64x128xf32, #tpu.memory_space<vmem>>, vector<64x128xf32>
    %cst_4 = arith.constant dense<0.000000e+00> : vector<16x128xf32>
    %9 = tpu.matmul %5, %8, %cst_4 {dimension_numbers = #tpu.dot_dimension_numbers<[1], [0], [0], [1], [0, 0, 1, 1], [], []>} : vector<16x64xf32>, vector<64x128xf32>, vector<16x128xf32> -> vector<16x128xf32>
    %10 = tpu.reciprocal %7 : vector<16x1xf32> -> vector<16x1xf32>
    %11 = vector.broadcast %10 : vector<16x1xf32> to vector<16x128xf32>
    %12 = arith.mulf %9, %11 : vector<16x128xf32>
    %c0_5 = arith.constant 0 : index
    %c0_6 = arith.constant 0 : index
    %13 = vector.load %arg3[%c0_5, %c0_6] : memref<16x128xf32, #tpu.memory_space<vmem>>, vector<16x128xf32>
    tpu.vector_store %arg3[%c0_5, %c0_6], %12 {strides = array<i32>} : memref<16x128xf32, #tpu.memory_space<vmem>>, vector<16x128xf32>,
    return
  }
  func.func @transform_0(%arg0: i32) -> (i32, i32) {
    %c0_i32 = arith.constant 0 : i32
    %c0_i32_0 = arith.constant 0 : i32
    return %arg0, %c0_i32 : i32, i32
  }
  func.func @transform_1(%arg0: i32) -> (i32, i32) {
    %c0_i32 = arith.constant 0 : i32
    %c0_i32_0 = arith.constant 0 : i32
    %c0_i32_1 = arith.constant 0 : i32
    return %c0_i32, %c0_i32_0 : i32, i32
  }
  func.func @transform_2(%arg0: i32) -> (i32, i32) {
    %c0_i32 = arith.constant 0 : i32
    %c0_i32_0 = arith.constant 0 : i32
    return %arg0, %c0_i32 : i32, i32
  }
}

</mosaic_0001>

<bundles_post_ra>
// kernel: tpu_custom_call.1
= control target key start
LH: loop header
LB: loop body
LE: loop exit
PB: predicated region body
PF: predicated region fallthrough
CT: control target
= control target key end

     0   :  { %7 = vsyncpa [#allocation3], 0  ;;  %s895_s0 = inlined_call_operand.hbm [shape: f32[32,64], index: 0, kind: input, shape index: {}]   ;;  %s896_s1 = inlined_call_operand.hbm [shape: f32[64,128], index: 1, kind: input, shape index: {}]   ;;  %s897_s2 = inlined_call_operand.hbm [shape: f32[32,128], index: 2, kind: output, shape index: {}]  }
   0x1   :  { %9 = vsyncpa [#allocation3 + $0x1], 0 }
   0x2   :  { %10 = vsyncpa [#allocation6], 0 }
   0x3   :  { %11 = vsyncpa [#allocation4], 0 }
   0x4   :  { %13 = vsyncpa [#allocation4 + $0x1], 0  ;;  %s678_s9 = smov 0   ;;  %s680_s10 = smov 0  }
   0x5   :  { %s682_s11 = smov 0   ;;  %s684_s12 = smov 0  }
   0x6 LB: > { %s699_s13 = sadd.s32 4294967295, %s654_s12   ;;  %s392_s14 = sadd.s32 4294967294, %s654_s12   ;;  %s654_s12 = sphi %s684_s12, %s917_s12   ;;  %s650_s11 = sphi %s682_s11, %s916_s11   ;;  %s646_s10 = sphi %s680_s10, %s915_s10   ;;  %s642_s9 = sphi %s678_s9, %s914_s9  }
   0x7   : > { %p39_p0 = scmp.ne.s32.totalorder %s646_s10, %s642_s9  ;;  %p898_p1 = scmp.eq.s32.totalorder %s699_s13, 0 }
   0x8   : > { %p90_p3 = scmp.eq.s32.totalorder %s392_s14, 1  ;;  %p393_p5 = scmp.ge.s32.totalorder %s654_s12, 1 }
   0x9   : > { %p708_p4 = por %p898_p1, %p39_p0  ;;  %p97_p7 = scmp.lt.s32.totalorder %s654_s12, 3 }
   0xa   : > { %p713_p6 = por %p90_p3, %p39_p0  ;;  %s656_s18 = smov [#allocation5]  }
   0xb   : > { %s901_s15 = scalar_select %p708_p4, 1, 0 }
   0xc   : > { %s902_s16 = scalar_select %p713_p6, 1, 0 }
   0xd   : > { %p718_p8 = pnand %p393_p5, %p97_p7  ;;  %s109_s19 = sshll.u32 %s656_s18, 4  ;;  %s722_s19 = int_to_ptr.vmem [resolvable:$true] %s109_s19 }
   0xe   : > { %s734_s21 = sadd.s32 1, %s654_s12   ;;  %s26_s22 = sadd.s32 1, %s650_s11 }
   0xf   : > { %s903_s17 = scalar_select %p718_p8, 1, 0 }
  0x10   : > { %p465_p9 = pneg %p718_p8  ;;  %s23_s23 = ssub.s32 %s654_s12, %s734_s21 }
  0x11   : > { %s526_s26 = scalar_lea.hbm %s896_s1, 1024 }
  0x12   : > { %p729_p11 = pnand %p465_p9, %p898_p1  ;;  %p527_p12 = scmp.ne.s32.totalorder %s896_s1, %s526_s26 }
  0x13   : > { %p533_p5 = scmp.lt.u32.totalorder %s526_s26, %s896_s1 }
  0x14   : > { %p528_p13 = pneg %p729_p11 }
  0x16   : > { %p529_p0 = pnand %p528_p13, %p527_p12 }
  0x18   : > { %p530_p3 = pneg %p529_p0 }
  0x1a   : > { %p535_p7 = pnand %p533_p5, %p530_p3 }
  0x1c   : > { %538 = shalt.err (!%p535_p7)
}
  0x1d   : > { %s539_s3 = scalar_lea.vmem %s722_s19, 1024  ;;  %p547_p2 = scmp.lt.s32.totalorder %s722_s19, %s722_s19 }
  0x1e   : > { %p540_p9 = scmp.ne.s32.totalorder %s722_s19, %s539_s3  ;;  %p548_p6 = scmp.lt.s32.totalorder %s539_s3, %s539_s3 }
  0x20   : > { %p542_p10 = pnand %p540_p9, %p528_p13  ;;  %p549_p4 = por %p548_p6, %p547_p2 }
  0x22   : > { %p543_p1 = pneg %p542_p10 }
  0x24   : > { %p550_p8 = pnand %p549_p4, %p543_p1 }
  0x26   : > { %553 = shalt.err (!%p550_p8)
}
  0x27   : > { %s657_s4 = smov 128   ;;  %s658_s5 = smov 8  }
  0x28   : > { %468 = dma.hbm_to_vmem [thread:$0]  (!%p729_p11), %s896_s1, 1024, %s722_s19, [#allocation6], %s657_s4, %s657_s4, %s658_s5  }
  0x29   : > { %p24_p1 = scmp.eq.s32.totalorder %s23_s23, 0  ;;  %p33_p2 = scmp.ne.s32.totalorder %s650_s11, %s646_s10 }
  0x2a   : > { %p34_p4 = scmp.eq.s32.totalorder %s654_s12, 0  ;;  %p478_p6 = scmp.lt.s32.totalorder %s654_s12, 2 }
  0x2b   : > { %s768_s8 = scalar_select %p24_p1, %s650_s11, %s26_s22  }
  0x2c   : > { %p35_p8 = por %p34_p4, %p33_p2  ;;  %p905_p10 = scmp.eq.s32.totalorder %s699_s13, 1 }
  0x2d   : > { %s123_s18 = sand.u32 1, %s650_s11   ;;  %s410_s20 = sshll.u32 %s654_s12, 8 }
  0x2e   : > { %p772_p12 = por %p905_p10, %p33_p2  ;;  %s396_s24 = sshll.u32 %s123_s18, 4 }
  0x2f   : > { %s781_s27 = scalar_lea.hbm %s895_s0, %s410_s20  ;;  %s127_s19 = scalar_lea.vmem [#allocation2], %s396_s24 }
  0x30   : > { %s134_s22 = sshll.u32 %s127_s19, 4  ;;  %p783_p11 = pnand %p478_p6, %p35_p8  ;;  %s787_s22 = int_to_ptr.vmem [resolvable:$true] %s134_s22 }
  0x31   : > { %s789_s28 = scalar_lea.sflag [#allocation3], %s123_s18  ;;  %s554_s29 = scalar_lea.hbm %s781_s27, 256 }
  0x32   : > { %p555_p13 = scmp.ne.s32.totalorder %s781_s27, %s554_s29  ;;  %p556_p0 = pneg %p783_p11 }
  0x33   : > { %s559_s6 = scalar_lea.hbm %s895_s0, 512  ;;  %p560_p7 = scmp.lt.u32.totalorder %s781_s27, %s895_s0 }
  0x34   : > { %p557_p3 = pnand %p556_p0, %p555_p13  ;;  %p561_p9 = scmp.lt.u32.totalorder %s559_s6, %s554_s29 }
  0x35   : > { %p563_p2 = scmp.lt.u32.totalorder %s554_s29, %s781_s27 }
  0x36   : > { %p558_p5 = pneg %p557_p3  ;;  %p562_p1 = por %p561_p9, %p560_p7 }
  0x38   : > { %p564_p4 = por %p563_p2, %p562_p1 }
  0x3a   : > { %p565_p6 = pnand %p564_p4, %p558_p5 }
  0x3c   : > { %568 = shalt.err (!%p565_p6)
}
  0x3d   : > { %s569_s18 = scalar_lea.vmem %s787_s22, 256  ;;  %s659_s24 = smov [#allocation2]  }
  0x3e   : > { %p570_p8 = scmp.ne.s32.totalorder %s787_s22, %s569_s18  ;;  %s574_s25 = sshll.u32 %s659_s24, 4  ;;  %s575_s25 = int_to_ptr.vmem [resolvable:$false] %s574_s25 }
  0x3f   : > { %s576_s26 = scalar_lea.vmem %s575_s25, 512  ;;  %p577_p3 = scmp.lt.s32.totalorder %s787_s22, %s575_s25 }
  0x40   : > { %p572_p10 = pnand %p570_p8, %p556_p0  ;;  %p578_p7 = scmp.lt.s32.totalorder %s576_s26, %s569_s18 }
  0x42   : > { %p573_p13 = pneg %p572_p10  ;;  %p579_p9 = por %p578_p7, %p577_p3 }
  0x44   : > { %p580_p1 = pnand %p579_p9, %p573_p13 }
  0x46   : > { %583 = shalt.err (!%p580_p1)
}
  0x47   : > { %472 = dma.hbm_to_vmem [thread:$0]  (!%p783_p11), %s781_s27, 256, %s787_s22, %s789_s28, %s657_s4, %s657_s4, %s658_s5  }
  0x48   : > { %p908_p0 = scmp.ne.s32.totalorder %s903_s17, 0 }
  0x49   : > { %s823_s19 = sand.u32 (!%p908_p0), 1, %s646_s10   ;;  %p909_p5 = scmp.ne.s32.totalorder (!%p908_p0), %s901_s15, 0 }
  0x4a   : > { %146 = sbr.rel (%p908_p0) target bundleno = 478 (0x1de), region = 28  ;;  %s400_s29 = sshll.u32 (!%p908_p0), %s823_s19, 4 }
  0x4b   : > { %s149_s30 = scalar_lea.sflag (!%p908_p0), [#allocation3], %s823_s19  ;;  %s152_s23 = scalar_lea.vmem (!%p908_p0), [#allocation2], %s400_s29 }
  0x51   : > { %629 = dma.done.wait (%p909_p5), %s149_s30, 256  }
  0x52   : > { %631 = vsyncadd (%p909_p5), %s149_s30, 4294967040  ;;  %p910_p11 = scmp.eq.s32.totalorder %s699_s13, 0 }
  0x54   : > { %633 = dma.done.wait (%p910_p11), [#allocation6], 1024   ;;  %p911_p2 = pmov %p910_p11 }
  0x55   : > { %vm181_vm0 = vcmask 523264   ;;  %v179_v0 = vld [vmem:[%s152_s23] sm:$0xff]  ;;  %v180_v1 = vld [vmem:[%s152_s23 + $0x8] sm:$0xff]  ;;  %s176_s15 = scalar_lea.vmem [#allocation7], %s400_s29  ;;  %s411_s4 = sshll.u32 %s699_s13, 8 }
  0x56   : > { %635 = vsyncadd (%p911_p2), [#allocation6], 4294966272  ;;  %v182_v2 = vsel %vm181_vm0, %v179_v0, -inf  ;;  %v185_v3 = vsel %vm181_vm0, %v180_v1, -inf  ;;  %v200_v4 = vld [vmem:[#allocation5] sm:$0xff]  ;;  %v201_v5 = vld [vmem:[#allocation5 + $0x8] sm:$0xff]  ;;  %s851_s22 = scalar_lea.hbm %s897_s2, %s411_s4 }
  0x57   : > { %183 = vmax.xlane.f32.xlu0 %v182_v2  ;;  %v441_v6 = vpack.c.bf16 %v201_v5, %v200_v4  ;;  %v202_v7 = vld [vmem:[#allocation5 + $0x10] sm:$0xff]  ;;  %v203_v8 = vld [vmem:[#allocation5 + $0x18] sm:$0xff]  ;;  %v204_v10 = vld [vmem:[#allocation5 + $0x20] sm:$0xff]  ;;  %s309_s17 = sshll.u32 %s176_s15, 4  ;;  %s296_s28 = scalar_lea.sflag [#allocation4], %s823_s19  ;;  %s846_s17 = int_to_ptr.vmem [resolvable:$true] %s309_s17 }
  0x58   : > { %v445_v9 = vpack.c.bf16 %v203_v8, %v202_v7  ;;  %v205_v11 = vld [vmem:[#allocation5 + $0x28] sm:$0xff]  ;;  %v206_v12 = vld [vmem:[#allocation5 + $0x30] sm:$0xff]  ;;  %v207_v14 = vld [vmem:[#allocation5 + $0x38] sm:$0xff]  ;;  %s584_s13 = scalar_lea.vmem %s846_s17, 256  ;;  %s660_s3 = smov [#allocation7]  }
  0x59   : > { %442 = vmatprep.subr.bf16.mxu0 %v441_v6  ;;  %v449_v13 = vpack.c.bf16 %v205_v11, %v204_v10  ;;  %v453_v15 = vpack.c.bf16 %v207_v14, %v206_v12  ;;  %p585_p4 = scmp.ne.s32.totalorder %s846_s17, %s584_s13  ;;  %s588_s6 = sshll.u32 %s660_s3, 4  ;;  %s589_s6 = int_to_ptr.vmem [resolvable:$false] %s588_s6 }
  0x5a   : > { %444 = vmatpush3.bf16.msra.mxu0 %v441_v6  ;;  %s590_s7 = scalar_lea.vmem %s589_s6, 512  ;;  %p591_p10 = scmp.lt.s32.totalorder %s846_s17, %s589_s6 }
  0x5b   : > { %186 = vmax.xlane.f32.xlu0 %v185_v3  ;;  %446 = vmatprep.subr.bf16.mxu0 %v445_v9  ;;  %p586_p6 = pnand %p585_p4, %p772_p12  ;;  %p592_p13 = scmp.lt.s32.totalorder %s590_s7, %s584_s13 }
  0x5d   : > { %p587_p8 = pneg %p586_p6  ;;  %p593_p3 = por %p592_p13, %p591_p10 }
  0x5e   : > { %448 = vmatpush3.bf16.msra.mxu0 %v445_v9 }
  0x5f   : > { %450 = vmatprep.subr.bf16.mxu0 %v449_v13  ;;  %p594_p7 = pnand %p593_p3, %p587_p8 }
  0x62   : > { %452 = vmatpush3.bf16.msra.mxu0 %v449_v13 }
  0x63   : > { %454 = vmatprep.subr.bf16.mxu0 %v453_v15 }
  0x66   : > { %456 = vmatpush3.bf16.msra.mxu0 %v453_v15 }
  0xe4   : > { %v184_v16 = vpop.xlane.xlu0 %183 }
  0xe5   : > { %v188_v17 = vsub.f32 %v179_v0, %v184_v16 }
  0xe7   : > { %v190_v18 = vmul.f32 1.442695, %v188_v17 }
  0xe8   : > { %v187_v19 = vpop.xlane.xlu0 %186 }
  0xe9   : > { %518 = vpow2.f32 %v190_v18  ;;  %v189_v20 = vsub.f32 %v180_v1, %v187_v19 }
  0xeb   : > { %v192_v21 = vmul.f32 1.442695, %v189_v20 }
  0xed   : > { %520 = vpow2.f32 %v192_v21 }
  0xf3   : > { %v519_v22 = vpop.eup %518 }
  0xf4   : > { %438 = vmatprep.mubr.msk.f32.mxu0 %vm181_vm0, %v519_v22  ;;  %v194_v23 = vsel %vm181_vm0, %v519_v22, 0.0 }
  0xf5   : > { %195 = vadd.xlane.f32.xlu1 %v194_v23 }
  0xf7   : > { %v521_v24 = vpop.eup %520 }
  0xf8   : > { %439 = vmatmul.mubr.msk.f32.vlgmr.msra.gmra.mrb[0].mxu0 %vm181_vm0, %v521_v24  ;;  %v197_v25 = vsel %vm181_vm0, %v521_v24, 0.0 }
  0xf9   : > { %198 = vadd.xlane.f32.xlu1 %v197_v25 }
 0x182   : > { %v196_v26 = vpop.xlane.xlu1 %195 }
 0x186   : > { %v199_v27 = vpop.xlane.xlu1 %198 }
 0x187   : > { %522 = vrcp.f32 %v199_v27 }
 0x188   : > { %524 = vrcp.f32 %v196_v26 }
 0x191   : > { %v523_v28 = vpop.eup %522 }
 0x192   : > { %v525_v30 = vpop.eup %524 }
 0x1cb   : > { %v440_v29 = vpop.f32.mrb[0].mxu0 }
 0x1cc   : > { %v292_v31 = vmul.f32 %v523_v28, %v440_v29  ;;  %v280_v32 = vpop.f32.mrb[1].mxu0 }
 0x1cd   : > { %v291_v33 = vmul.f32 %v525_v30, %v280_v32 }
 0x1ce   : > { %294 = vst [vmem:[%s176_s15 + $0x8] sm:$0xff] %v292_v31 }
 0x1cf   : > { %293 = vst [vmem:[%s176_s15] sm:$0xff] %v291_v33 }
 0x1d0   : > { %597 = shalt.err (!%p594_p7)
}
 0x1d1   : > { %s598_s20 = scalar_lea.hbm %s851_s22, 256  ;;  %s602_s25 = scalar_lea.hbm %s897_s2, 512 }
 0x1d2   : > { %p599_p9 = scmp.ne.s32.totalorder %s851_s22, %s598_s20  ;;  %p603_p5 = scmp.lt.u32.totalorder %s851_s22, %s897_s2 }
 0x1d3   : > { %p604_p11 = scmp.lt.u32.totalorder %s602_s25, %s598_s20  ;;  %p606_p4 = scmp.lt.u32.totalorder %s598_s20, %s851_s22 }
 0x1d4   : > { %p600_p1 = pnand %p599_p9, %p772_p12 }
 0x1d5   : > { %p605_p2 = por %p604_p11, %p603_p5 }
 0x1d6   : > { %p601_p0 = pneg %p600_p1 }
 0x1d7   : > { %p607_p6 = por %p606_p4, %p605_p2 }
 0x1d9   : > { %p608_p8 = pnand %p607_p6, %p601_p0 }
 0x1db   : > { %611 = shalt.err (!%p608_p8)
}
 0x1dc   : > { %s661_s30 = smov 128   ;;  %s662_s23 = smov 8  }
 0x1dd   : > { %463 = dma.vmem_to_hbm [thread:$0]  (%p772_p12), %s846_s17, 256, %s851_s22, %s296_s28, %s661_s30, %s661_s30, %s662_s23  }
 0x1de PF: > { %s324_s15 = sand.u32 1, %s642_s9   ;;  %p912_p10 = scmp.ne.s32.totalorder %s902_s16, 0 }
 0x1df   : > { %p913_p13 = scmp.ge.s32.totalorder %s654_s12, 2  ;;  %s325_s4 = scalar_lea.sflag [#allocation4], %s324_s15 }
 0x1e1   : > { %p474_p3 = pnand %p913_p13, %p912_p10 }
 0x1e3   : > { %637 = dma.done.wait (!%p474_p3), %s325_s4, 256  }
 0x1e4   : > { %639 = vsyncadd (!%p474_p3), %s325_s4, 4294967040  ;;  %p16_p7 = scmp.ge.s32.totalorder %s734_s21, 4   ;;  %s914_s9 = smov %s646_s10 }
 0x1e5   : > { %s915_s10 = smov %s650_s11  ;;  %s916_s11 = smov %s768_s8 }
 0x1e6   : > { %s917_s12 = smov %s734_s21  ;;  %18 = sbr.rel (!%p16_p7) target bundleno = 6 (0x6), region = 77 }
 0x1ed   :  { %330 = vsyncpa [#allocation3], 1 }
 0x1ee   :  { %332 = vsyncpa [#allocation3 + $0x1], 1 }
 0x1ef   :  { %333 = vsyncpa [#allocation6], 1 }
 0x1f0   :  { %334 = vsyncpa [#allocation4], 1 }
 0x1f1   :  { %336 = vsyncpa [#allocation4 + $0x1], 1 }

// kernel: tpu_custom_call.1
= control target key start
LH: loop header
LB: loop body
LE: loop exit
PB: predicated region body
PF: predicated region fallthrough
CT: control target
= control target key end

     0   :  { %7 = vsyncpa [#allocation3], 0  ;;  %s895_s0 = inlined_call_operand.hbm [shape: f32[32,64], index: 0, kind: input, shape index: {}]   ;;  %s896_s1 = inlined_call_operand.hbm [shape: f32[64,128], index: 1, kind: input, shape index: {}]   ;;  %s897_s2 = inlined_call_operand.hbm [shape: f32[32,128], index: 2, kind: output, shape index: {}]  }
   0x1   :  { %9 = vsyncpa [#allocation3 + $0x1], 0 }
   0x2   :  { %10 = vsyncpa [#allocation6], 0 }
   0x3   :  { %11 = vsyncpa [#allocation4], 0 }
   0x4   :  { %13 = vsyncpa [#allocation4 + $0x1], 0  ;;  %s678_s9 = smov 0   ;;  %s680_s10 = smov 0  }
   0x5   :  { %s682_s11 = smov 0   ;;  %s684_s12 = smov 0  }
   0x6 LB: > { %s699_s13 = sadd.s32 4294967295, %s654_s12   ;;  %s392_s14 = sadd.s32 4294967294, %s654_s12   ;;  %s654_s12 = sphi %s684_s12, %s917_s12   ;;  %s650_s11 = sphi %s682_s11, %s916_s11   ;;  %s646_s10 = sphi %s680_s10, %s915_s10   ;;  %s642_s9 = sphi %s678_s9, %s914_s9  }
   0x7   : > { %p39_p0 = scmp.ne.s32.totalorder %s646_s10, %s642_s9  ;;  %p898_p1 = scmp.eq.s32.totalorder %s699_s13, 0 }
   0x8   : > { %p90_p3 = scmp.eq.s32.totalorder %s392_s14, 1  ;;  %p393_p5 = scmp.ge.s32.totalorder %s654_s12, 1 }
   0x9   : > { %p708_p4 = por %p898_p1, %p39_p0  ;;  %p97_p7 = scmp.lt.s32.totalorder %s654_s12, 3 }
   0xa   : > { %p713_p6 = por %p90_p3, %p39_p0  ;;  %s656_s18 = smov [#allocation5]  }
   0xb   : > { %s901_s15 = scalar_select %p708_p4, 1, 0 }
   0xc   : > { %s902_s16 = scalar_select %p713_p6, 1, 0 }
   0xd   : > { %p718_p8 = pnand %p393_p5, %p97_p7  ;;  %s109_s19 = sshll.u32 %s656_s18, 4  ;;  %s722_s19 = int_to_ptr.vmem [resolvable:$true] %s109_s19 }
   0xe   : > { %s734_s21 = sadd.s32 1, %s654_s12   ;;  %s26_s22 = sadd.s32 1, %s650_s11 }
   0xf   : > { %s903_s17 = scalar_select %p718_p8, 1, 0 }
  0x10   : > { %p465_p9 = pneg %p718_p8  ;;  %s23_s23 = ssub.s32 %s654_s12, %s734_s21 }
  0x11   : > { %s526_s26 = scalar_lea.hbm %s896_s1, 1024 }
  0x12   : > { %p729_p11 = pnand %p465_p9, %p898_p1  ;;  %p527_p12 = scmp.ne.s32.totalorder %s896_s1, %s526_s26 }
  0x13   : > { %p533_p5 = scmp.lt.u32.totalorder %s526_s26, %s896_s1 }
  0x14   : > { %p528_p13 = pneg %p729_p11 }
  0x16   : > { %p529_p0 = pnand %p528_p13, %p527_p12 }
  0x18   : > { %p530_p3 = pneg %p529_p0 }
  0x1a   : > { %p535_p7 = pnand %p533_p5, %p530_p3 }
  0x1c   : > { %538 = shalt.err (!%p535_p7)
}
  0x1d   : > { %s539_s3 = scalar_lea.vmem %s722_s19, 1024  ;;  %p547_p2 = scmp.lt.s32.totalorder %s722_s19, %s722_s19 }
  0x1e   : > { %p540_p9 = scmp.ne.s32.totalorder %s722_s19, %s539_s3  ;;  %p548_p6 = scmp.lt.s32.totalorder %s539_s3, %s539_s3 }
  0x20   : > { %p542_p10 = pnand %p540_p9, %p528_p13  ;;  %p549_p4 = por %p548_p6, %p547_p2 }
  0x22   : > { %p543_p1 = pneg %p542_p10 }
  0x24   : > { %p550_p8 = pnand %p549_p4, %p543_p1 }
  0x26   : > { %553 = shalt.err (!%p550_p8)
}
  0x27   : > { %s657_s4 = smov 128   ;;  %s658_s5 = smov 8  }
  0x28   : > { %468 = dma.hbm_to_vmem [thread:$0]  (!%p729_p11), %s896_s1, 1024, %s722_s19, [#allocation6], %s657_s4, %s657_s4, %s658_s5  }
  0x29   : > { %p24_p1 = scmp.eq.s32.totalorder %s23_s23, 0  ;;  %p33_p2 = scmp.ne.s32.totalorder %s650_s11, %s646_s10 }
  0x2a   : > { %p34_p4 = scmp.eq.s32.totalorder %s654_s12, 0  ;;  %p478_p6 = scmp.lt.s32.totalorder %s654_s12, 2 }
  0x2b   : > { %s768_s8 = scalar_select %p24_p1, %s650_s11, %s26_s22  }
  0x2c   : > { %p35_p8 = por %p34_p4, %p33_p2  ;;  %p905_p10 = scmp.eq.s32.totalorder %s699_s13, 1 }
  0x2d   : > { %s123_s18 = sand.u32 1, %s650_s11   ;;  %s410_s20 = sshll.u32 %s654_s12, 8 }
  0x2e   : > { %p772_p12 = por %p905_p10, %p33_p2  ;;  %s396_s24 = sshll.u32 %s123_s18, 4 }
  0x2f   : > { %s781_s27 = scalar_lea.hbm %s895_s0, %s410_s20  ;;  %s127_s19 = scalar_lea.vmem [#allocation2], %s396_s24 }
  0x30   : > { %s134_s22 = sshll.u32 %s127_s19, 4  ;;  %p783_p11 = pnand %p478_p6, %p35_p8  ;;  %s787_s22 = int_to_ptr.vmem [resolvable:$true] %s134_s22 }
  0x31   : > { %s789_s28 = scalar_lea.sflag [#allocation3], %s123_s18  ;;  %s554_s29 = scalar_lea.hbm %s781_s27, 256 }
  0x32   : > { %p555_p13 = scmp.ne.s32.totalorder %s781_s27, %s554_s29  ;;  %p556_p0 = pneg %p783_p11 }
  0x33   : > { %s559_s6 = scalar_lea.hbm %s895_s0, 512  ;;  %p560_p7 = scmp.lt.u32.totalorder %s781_s27, %s895_s0 }
  0x34   : > { %p557_p3 = pnand %p556_p0, %p555_p13  ;;  %p561_p9 = scmp.lt.u32.totalorder %s559_s6, %s554_s29 }
  0x35   : > { %p563_p2 = scmp.lt.u32.totalorder %s554_s29, %s781_s27 }
  0x36   : > { %p558_p5 = pneg %p557_p3  ;;  %p562_p1 = por %p561_p9, %p560_p7 }
  0x38   : > { %p564_p4 = por %p563_p2, %p562_p1 }
  0x3a   : > { %p565_p6 = pnand %p564_p4, %p558_p5 }
  0x3c   : > { %568 = shalt.err (!%p565_p6)
}
  0x3d   : > { %s569_s18 = scalar_lea.vmem %s787_s22, 256  ;;  %s659_s24 = smov [#allocation2]  }
  0x3e   : > { %p570_p8 = scmp.ne.s32.totalorder %s787_s22, %s569_s18  ;;  %s574_s25 = sshll.u32 %s659_s24, 4  ;;  %s575_s25 = int_to_ptr.vmem [resolvable:$false] %s574_s25 }
  0x3f   : > { %s576_s26 = scalar_lea.vmem %s575_s25, 512  ;;  %p577_p3 = scmp.lt.s32.totalorder %s787_s22, %s575_s25 }
  0x40   : > { %p572_p10 = pnand %p570_p8, %p556_p0  ;;  %p578_p7 = scmp.lt.s32.totalorder %s576_s26, %s569_s18 }
  0x42   : > { %p573_p13 = pneg %p572_p10  ;;  %p579_p9 = por %p578_p7, %p577_p3 }
  0x44   : > { %p580_p1 = pnand %p579_p9, %p573_p13 }
  0x46   : > { %583 = shalt.err (!%p580_p1)
}
  0x47   : > { %472 = dma.hbm_to_vmem [thread:$0]  (!%p783_p11), %s781_s27, 256, %s787_s22, %s789_s28, %s657_s4, %s657_s4, %s658_s5  }
  0x48   : > { %p908_p0 = scmp.ne.s32.totalorder %s903_s17, 0 }
  0x49   : > { %s823_s19 = sand.u32 (!%p908_p0), 1, %s646_s10   ;;  %p909_p5 = scmp.ne.s32.totalorder (!%p908_p0), %s901_s15, 0 }
  0x4a   : > { %146 = sbr.rel (%p908_p0) target bundleno = 478 (0x1de), region = 28  ;;  %s400_s29 = sshll.u32 (!%p908_p0), %s823_s19, 4 }
  0x4b   : > { %s149_s30 = scalar_lea.sflag (!%p908_p0), [#allocation3], %s823_s19  ;;  %s152_s23 = scalar_lea.vmem (!%p908_p0), [#allocation2], %s400_s29 }
  0x51   : > { %629 = dma.done.wait (%p909_p5), %s149_s30, 256  }
  0x52   : > { %631 = vsyncadd (%p909_p5), %s149_s30, 4294967040  ;;  %p910_p11 = scmp.eq.s32.totalorder %s699_s13, 0 }
  0x54   : > { %633 = dma.done.wait (%p910_p11), [#allocation6], 1024   ;;  %p911_p2 = pmov %p910_p11 }
  0x55   : > { %vm181_vm0 = vcmask 523264   ;;  %v179_v0 = vld [vmem:[%s152_s23] sm:$0xff]  ;;  %v180_v1 = vld [vmem:[%s152_s23 + $0x8] sm:$0xff]  ;;  %s176_s15 = scalar_lea.vmem [#allocation7], %s400_s29  ;;  %s411_s4 = sshll.u32 %s699_s13, 8 }
  0x56   : > { %635 = vsyncadd (%p911_p2), [#allocation6], 4294966272  ;;  %v182_v2 = vsel %vm181_vm0, %v179_v0, -inf  ;;  %v185_v3 = vsel %vm181_vm0, %v180_v1, -inf  ;;  %v200_v4 = vld [vmem:[#allocation5] sm:$0xff]  ;;  %v201_v5 = vld [vmem:[#allocation5 + $0x8] sm:$0xff]  ;;  %s851_s22 = scalar_lea.hbm %s897_s2, %s411_s4 }
  0x57   : > { %183 = vmax.xlane.f32.xlu0 %v182_v2  ;;  %v441_v6 = vpack.c.bf16 %v201_v5, %v200_v4  ;;  %v202_v7 = vld [vmem:[#allocation5 + $0x10] sm:$0xff]  ;;  %v203_v8 = vld [vmem:[#allocation5 + $0x18] sm:$0xff]  ;;  %v204_v10 = vld [vmem:[#allocation5 + $0x20] sm:$0xff]  ;;  %s309_s17 = sshll.u32 %s176_s15, 4  ;;  %s296_s28 = scalar_lea.sflag [#allocation4], %s823_s19  ;;  %s846_s17 = int_to_ptr.vmem [resolvable:$true] %s309_s17 }
  0x58   : > { %v445_v9 = vpack.c.bf16 %v203_v8, %v202_v7  ;;  %v205_v11 = vld [vmem:[#allocation5 + $0x28] sm:$0xff]  ;;  %v206_v12 = vld [vmem:[#allocation5 + $0x30] sm:$0xff]  ;;  %v207_v14 = vld [vmem:[#allocation5 + $0x38] sm:$0xff]  ;;  %s584_s13 = scalar_lea.vmem %s846_s17, 256  ;;  %s660_s3 = smov [#allocation7]  }
  0x59   : > { %442 = vmatprep.subr.bf16.mxu0 %v441_v6  ;;  %v449_v13 = vpack.c.bf16 %v205_v11, %v204_v10  ;;  %v453_v15 = vpack.c.bf16 %v207_v14, %v206_v12  ;;  %p585_p4 = scmp.ne.s32.totalorder %s846_s17, %s584_s13  ;;  %s588_s6 = sshll.u32 %s660_s3, 4  ;;  %s589_s6 = int_to_ptr.vmem [resolvable:$false] %s588_s6 }
  0x5a   : > { %444 = vmatpush3.bf16.msra.mxu0 %v441_v6  ;;  %s590_s7 = scalar_lea.vmem %s589_s6, 512  ;;  %p591_p10 = scmp.lt.s32.totalorder %s846_s17, %s589_s6 }
  0x5b   : > { %186 = vmax.xlane.f32.xlu0 %v185_v3  ;;  %446 = vmatprep.subr.bf16.mxu0 %v445_v9  ;;  %p586_p6 = pnand %p585_p4, %p772_p12  ;;  %p592_p13 = scmp.lt.s32.totalorder %s590_s7, %s584_s13 }
  0x5d   : > { %p587_p8 = pneg %p586_p6  ;;  %p593_p3 = por %p592_p13, %p591_p10 }
  0x5e   : > { %448 = vmatpush3.bf16.msra.mxu0 %v445_v9 }
  0x5f   : > { %450 = vmatprep.subr.bf16.mxu0 %v449_v13  ;;  %p594_p7 = pnand %p593_p3, %p587_p8 }
  0x62   : > { %452 = vmatpush3.bf16.msra.mxu0 %v449_v13 }
  0x63   : > { %454 = vmatprep.subr.bf16.mxu0 %v453_v15 }
  0x66   : > { %456 = vmatpush3.bf16.msra.mxu0 %v453_v15 }
  0xe4   : > { %v184_v16 = vpop.xlane.xlu0 %183 }
  0xe5   : > { %v188_v17 = vsub.f32 %v179_v0, %v184_v16 }
  0xe7   : > { %v190_v18 = vmul.f32 1.442695, %v188_v17 }
  0xe8   : > { %v187_v19 = vpop.xlane.xlu0 %186 }
  0xe9   : > { %518 = vpow2.f32 %v190_v18  ;;  %v189_v20 = vsub.f32 %v180_v1, %v187_v19 }
  0xeb   : > { %v192_v21 = vmul.f32 1.442695, %v189_v20 }
  0xed   : > { %520 = vpow2.f32 %v192_v21 }
  0xf3   : > { %v519_v22 = vpop.eup %518 }
  0xf4   : > { %438 = vmatprep.mubr.msk.f32.mxu0 %vm181_vm0, %v519_v22  ;;  %v194_v23 = vsel %vm181_vm0, %v519_v22, 0.0 }
  0xf5   : > { %195 = vadd.xlane.f32.xlu1 %v194_v23 }
  0xf7   : > { %v521_v24 = vpop.eup %520 }
  0xf8   : > { %439 = vmatmul.mubr.msk.f32.vlgmr.msra.gmra.mrb[0].mxu0 %vm181_vm0, %v521_v24  ;;  %v197_v25 = vsel %vm181_vm0, %v521_v24, 0.0 }
  0xf9   : > { %198 = vadd.xlane.f32.xlu1 %v197_v25 }
 0x182   : > { %v196_v26 = vpop.xlane.xlu1 %195 }
 0x186   : > { %v199_v27 = vpop.xlane.xlu1 %198 }
 0x187   : > { %522 = vrcp.f32 %v199_v27 }
 0x188   : > { %524 = vrcp.f32 %v196_v26 }
 0x191   : > { %v523_v28 = vpop.eup %522 }
 0x192   : > { %v525_v30 = vpop.eup %524 }
 0x1cb   : > { %v440_v29 = vpop.f32.mrb[0].mxu0 }
 0x1cc   : > { %v292_v31 = vmul.f32 %v523_v28, %v440_v29  ;;  %v280_v32 = vpop.f32.mrb[1].mxu0 }
 0x1cd   : > { %v291_v33 = vmul.f32 %v525_v30, %v280_v32 }
 0x1ce   : > { %294 = vst [vmem:[%s176_s15 + $0x8] sm:$0xff] %v292_v31 }
 0x1cf   : > { %293 = vst [vmem:[%s176_s15] sm:$0xff] %v291_v33 }
 0x1d0   : > { %597 = shalt.err (!%p594_p7)
}
 0x1d1   : > { %s598_s20 = scalar_lea.hbm %s851_s22, 256  ;;  %s602_s25 = scalar_lea.hbm %s897_s2, 512 }
 0x1d2   : > { %p599_p9 = scmp.ne.s32.totalorder %s851_s22, %s598_s20  ;;  %p603_p5 = scmp.lt.u32.totalorder %s851_s22, %s897_s2 }
 0x1d3   : > { %p604_p11 = scmp.lt.u32.totalorder %s602_s25, %s598_s20  ;;  %p606_p4 = scmp.lt.u32.totalorder %s598_s20, %s851_s22 }
 0x1d4   : > { %p600_p1 = pnand %p599_p9, %p772_p12 }
 0x1d5   : > { %p605_p2 = por %p604_p11, %p603_p5 }
 0x1d6   : > { %p601_p0 = pneg %p600_p1 }
 0x1d7   : > { %p607_p6 = por %p606_p4, %p605_p2 }
 0x1d9   : > { %p608_p8 = pnand %p607_p6, %p601_p0 }
 0x1db   : > { %611 = shalt.err (!%p608_p8)
}
 0x1dc   : > { %s661_s30 = smov 128   ;;  %s662_s23 = smov 8  }
 0x1dd   : > { %463 = dma.vmem_to_hbm [thread:$0]  (%p772_p12), %s846_s17, 256, %s851_s22, %s296_s28, %s661_s30, %s661_s30, %s662_s23  }
 0x1de PF: > { %s324_s15 = sand.u32 1, %s642_s9   ;;  %p912_p10 = scmp.ne.s32.totalorder %s902_s16, 0 }
 0x1df   : > { %p913_p13 = scmp.ge.s32.totalorder %s654_s12, 2  ;;  %s325_s4 = scalar_lea.sflag [#allocation4], %s324_s15 }
 0x1e1   : > { %p474_p3 = pnand %p913_p13, %p912_p10 }
 0x1e3   : > { %637 = dma.done.wait (!%p474_p3), %s325_s4, 256  }
 0x1e4   : > { %639 = vsyncadd (!%p474_p3), %s325_s4, 4294967040  ;;  %p16_p7 = scmp.ge.s32.totalorder %s734_s21, 4   ;;  %s914_s9 = smov %s646_s10 }
 0x1e5   : > { %s915_s10 = smov %s650_s11  ;;  %s916_s11 = smov %s768_s8 }
 0x1e6   : > { %s917_s12 = smov %s734_s21  ;;  %18 = sbr.rel (!%p16_p7) target bundleno = 6 (0x6), region = 77 }
 0x1ed   :  { %330 = vsyncpa [#allocation3], 1 }
 0x1ee   :  { %332 = vsyncpa [#allocation3 + $0x1], 1 }
 0x1ef   :  { %333 = vsyncpa [#allocation6], 1 }
 0x1f0   :  { %334 = vsyncpa [#allocation4], 1 }
 0x1f1   :  { %336 = vsyncpa [#allocation4 + $0x1], 1 }

</bundles_post_ra>
